<compile_context>
chip_gen: v7x
topology: tpu7x:2x2x1
jax: 0.10.0
libtpu: 0.0.40
codegen_flags: <defaults>
</compile_context>

<pallas_src>
import jax
import jax.numpy as jnp
from jax.experimental import pallas as pl
from jax.experimental.pallas import tpu as pltpu


def _attention_kernel(x_ref, w1_ref, b1_ref, w2_ref, o_ref):
    # x_ref:  (TB, S, D) f32 tile of TB batch elements
    # w1_ref: (D, D)     bf16 first linear weight, (in, out) layout
    # b1_ref: (1, D)     f32 first linear bias
    # w2_ref: (1, D)     f32 second linear weight (Linear(dim, 1, bias=False))
    # o_ref:  (TB, D)    output tile
    tb, s, d = x_ref.shape
    x = x_ref[...]                                             # (TB, S, D) f32

    # --- Linear(dim, dim) + Tanh: one (TB*S, D) x (D, D) MXU matmul, f32 accumulate.
    # Reshape touches leading dims only (lane dim unchanged) -> layout-friendly.
    x2 = x.reshape(tb * s, d).astype(jnp.bfloat16)
    h2 = jnp.tanh(
        jnp.dot(x2, w1_ref[...], preferred_element_type=jnp.float32)
        + b1_ref[...]                                          # (1, D) broadcast, f32
    )                                                          # (TB*S, D) f32

    # --- Linear(dim, 1, bias=False): lane reduction over D gives a lane-dense
    # (TB, S) score slab, so the softmax reductions run across the lane axis.
    scores = jnp.sum(h2.reshape(tb, s, d) * w2_ref[...][None], axis=-1)   # (TB, S)

    # --- Softmax over the sequence axis (torch dim=1), numerically stabilized.
    scores = scores - jnp.max(scores, axis=-1, keepdims=True)
    e = jnp.exp(scores)
    a = e * pl.reciprocal(jnp.sum(e, axis=-1, keepdims=True), approx=True)  # (TB, S)

    # --- Weighted sum over the sequence: (x * a).sum(dim=1) -> (TB, D), f32 acc.
    # TODO(synk): when D < 128 a lane-packed (TB//k, k*D) output block would avoid
    # masked vst partial stores, but it needs a lane-changing in-kernel reshape;
    # output traffic is only 1/S of the input traffic, so it is left out for
    # lowering robustness.
    o_ref[...] = jnp.sum(x * a[..., None], axis=1).astype(o_ref.dtype)


def _choose_tb(B, S, D, itemsize, target_bytes=4 << 20):
    """Batch-tile size: ~target_bytes of x per step, multiple of 8, >=2 grid steps."""
    per_row = max(1, S * D * itemsize)
    tb = max(1, target_bytes // per_row)
    tb = min(tb, max(1, B // 2))          # >=2 grid steps when possible (v7x 2 TCs)
    if B < 8:
        return int(B)                     # tiny batch: one full block (== array dims)
    tb = max(8, (tb // 8) * 8)            # sublane-clean (8,128)-friendly out blocks
    tb = min(tb, B)
    t = tb
    while t >= 8 and B % t != 0:          # prefer a divisor of B: no partial block
        t -= 8
    if t >= 8:
        tb = t
    return int(tb)


def attention_layer(x, w1_t, b1, w2, *, tb=None):
    """x: (B, S, D); w1_t: (D, D) (in, out); b1: (1, D); w2: (1, D) -> (B, D)."""
    B, S, D = x.shape
    itemsize = jnp.dtype(x.dtype).itemsize
    if tb is None:
        tb = _choose_tb(B, S, D, itemsize)
    tb = int(max(1, min(tb, B)))
    grid = (pl.cdiv(B, tb),)

    # bf16 weight for the MXU: cast once here, not once per grid step in the kernel.
    w1_bf16 = w1_t.astype(jnp.bfloat16)
    # TODO(synk): if downstream numerics allow, feed x in bf16 too (halves the
    # dominant HBM read traffic); kept f32 here to track the PyTorch module closely.

    # VMEM budget: 2x double-buffered x tile + ~3x tile of live intermediates
    # (bf16 x2 copy, f32 h2, exp slab) + 2x bf16 w1 buffers + out tiles + slack.
    x_tile_bytes = tb * S * D * itemsize
    needed = 5 * x_tile_bytes + 2 * (D * D * 2) + 4 * tb * D * 4 + (4 << 20)
    vmem_limit = int(min(max(needed, 32 << 20), 56 << 20))   # fits v5e/v6e/v7x

    cost = pl.CostEstimate(
        flops=2 * B * S * D * (D + 2),
        transcendentals=B * S * (D + 1),
        bytes_accessed=B * S * D * itemsize + B * D * itemsize + D * D * 2 + 2 * D * 4,
    )

    return pl.pallas_call(
        _attention_kernel,
        out_shape=jax.ShapeDtypeStruct((B, D), x.dtype),
        grid_spec=pltpu.PrefetchScalarGridSpec(
            num_scalar_prefetch=0,
            grid=grid,
            in_specs=[
                pl.BlockSpec((tb, S, D), lambda i: (i, 0, 0)),  # per-step batch tile
                pl.BlockSpec((D, D), lambda i: (0, 0)),         # w1 bf16 (constant)
                pl.BlockSpec((1, D), lambda i: (0, 0)),         # b1 (constant)
                pl.BlockSpec((1, D), lambda i: (0, 0)),         # w2 (constant)
            ],
            out_specs=pl.BlockSpec((tb, D), lambda i: (i, 0)),  # sublane-clean out tile
        ),
        compiler_params=pltpu.CompilerParams(
            # Batch-tile axis is independent -> shards across v7x's 2 TensorCores.
            dimension_semantics=("parallel",),
            vmem_limit_bytes=vmem_limit,
        ),
        cost_estimate=cost,
    )(x, w1_bf16, b1, w2)


def reference(x, w1_t, b1, w2):
    """Pure-JAX reference matching the PyTorch forward (f32 throughout)."""
    h = jnp.tanh(jnp.einsum("bsd,de->bse", x, w1_t) + b1[None, :, :])   # (B, S, D)
    scores = jnp.einsum("bsd,d->bs", h, w2[0])[..., None]               # (B, S, 1)
    a = jax.nn.softmax(scores, axis=1)                                  # softmax over seq
    return jnp.sum(x * a, axis=1)                                       # (B, D)


if __name__ == "__main__":
    B, S, D = 16, 8, 32   # small; heuristic picks tb=8 -> 2 parallel grid steps

    key = jax.random.PRNGKey(0)
    kx, kw1, kb1, kw2 = jax.random.split(key, 4)

    x = jax.random.normal(kx, (B, S, D), dtype=jnp.float32)

    # Deterministic parameter init (torch Linear default would be uniform; any
    # deterministic init is fine for this synthetic test).
    w1_torch = jax.random.normal(kw1, (D, D), dtype=jnp.float32) * 0.1   # (out, in)
    w1_t = w1_torch.T                                                    # (in, out)
    b1 = (jax.random.normal(kb1, (D,), dtype=jnp.float32) * 0.1).reshape(1, D)
    w2 = jax.random.normal(kw2, (1, D), dtype=jnp.float32) * 0.1         # Linear(dim,1,no bias)

    out = jax.block_until_ready(attention_layer(x, w1_t, b1, w2))
    ref = reference(x, w1_t, b1, w2)

    assert out.shape == (B, D)
    # bf16 MXU operands + approx reciprocal loosen agreement vs the pure-f32 reference.
    assert jnp.allclose(out, ref, atol=2e-2, rtol=2e-2), "mismatch vs reference"

    print("KERNEL_OK")
</pallas_src>

<mosaic_0001>
module attributes {stable_mosaic.version = 11 : i64} {
  func.func @_attention_kernel(%arg0: i32, %arg1: memref<8x8x32xf32, #tpu.memory_space<vmem>>, %arg2: memref<32x32xbf16, #tpu.memory_space<vmem>>, %arg3: memref<1x32xf32, #tpu.memory_space<vmem>>, %arg4: memref<1x32xf32, #tpu.memory_space<vmem>>, %arg5: memref<8x32xf32, #tpu.memory_space<vmem>>) attributes {dimension_semantics = [#tpu.dimension_semantics<parallel>], iteration_bounds = array<i64: 2>, scalar_prefetch = 0 : i64, scratch_operands = 0 : i64, tpu.core_type = #tpu.core_type<tc>, window_params = [{transform_indices = @transform_0, window_bounds = array<i64: 8, 8, 32>}, {pipeline_mode = #tpu.pipeline_mode<synchronous>, transform_indices = @transform_1, window_bounds = array<i64: 32, 32>}, {pipeline_mode = #tpu.pipeline_mode<synchronous>, transform_indices = @transform_2, window_bounds = array<i64: 1, 32>}, {pipeline_mode = #tpu.pipeline_mode<synchronous>, transform_indices = @transform_3, window_bounds = array<i64: 1, 32>}, {transform_indices = @transform_4, window_bounds = array<i64: 8, 32>}]} {
    %c0 = arith.constant 0 : index
    %c0_0 = arith.constant 0 : index
    %c0_1 = arith.constant 0 : index
    %0 = vector.load %arg1[%c0, %c0_0, %c0_1] : memref<8x8x32xf32, #tpu.memory_space<vmem>>, vector<8x8x32xf32>
    %1 = vector.shape_cast %0 : vector<8x8x32xf32> to vector<64x32xf32>
    %2 = arith.truncf %1 : vector<64x32xf32> to vector<64x32xbf16>
    %c0_2 = arith.constant 0 : index
    %c0_3 = arith.constant 0 : index
    %3 = vector.load %arg2[%c0_2, %c0_3] : memref<32x32xbf16, #tpu.memory_space<vmem>>, vector<32x32xbf16>
    %cst = arith.constant dense<0.000000e+00> : vector<64x32xf32>
    %4 = tpu.matmul %2, %3, %cst {dimension_numbers = #tpu.dot_dimension_numbers<[1], [0], [0], [1], [0, 0, 1, 1], [], []>} : vector<64x32xbf16>, vector<32x32xbf16>, vector<64x32xf32> -> vector<64x32xf32>
    %c0_4 = arith.constant 0 : index
    %c0_5 = arith.constant 0 : index
    %5 = vector.load %arg3[%c0_4, %c0_5] : memref<1x32xf32, #tpu.memory_space<vmem>>, vector<1x32xf32>
    %6 = vector.broadcast %5 : vector<1x32xf32> to vector<64x32xf32>
    %7 = arith.addf %4, %6 : vector<64x32xf32>
    %8 = math.tanh %7 : vector<64x32xf32>
    %9 = vector.shape_cast %8 : vector<64x32xf32> to vector<8x8x32xf32>
    %c0_6 = arith.constant 0 : index
    %c0_7 = arith.constant 0 : index
    %10 = vector.load %arg4[%c0_6, %c0_7] : memref<1x32xf32, #tpu.memory_space<vmem>>, vector<1x32xf32>
    %11 = vector.shape_cast %10 : vector<1x32xf32> to vector<1x1x32xf32>
    %12 = vector.broadcast %11 : vector<1x1x32xf32> to vector<8x8x32xf32>
    %13 = arith.mulf %9, %12 : vector<8x8x32xf32>
    %cst_8 = arith.constant dense<0.000000e+00> : vector<8x8xf32>
    %14 = vector.multi_reduction <add>, %13, %cst_8 [2] : vector<8x8x32xf32> to vector<8x8xf32>
    %cst_9 = arith.constant dense<0xFF800000> : vector<8xf32>
    %15 = vector.multi_reduction <maximumf>, %14, %cst_9 [1] : vector<8x8xf32> to vector<8xf32>
    %16 = vector.shape_cast %15 : vector<8xf32> to vector<8x1xf32>
    %17 = vector.broadcast %16 : vector<8x1xf32> to vector<8x8xf32>
    %18 = arith.subf %14, %17 : vector<8x8xf32>
    %19 = math.exp %18 : vector<8x8xf32>
    %cst_10 = arith.constant dense<0.000000e+00> : vector<8xf32>
    %20 = vector.multi_reduction <add>, %19, %cst_10 [1] : vector<8x8xf32> to vector<8xf32>
    %21 = vector.shape_cast %20 : vector<8xf32> to vector<8x1xf32>
    %22 = tpu.reciprocal %21 {approx = true} : vector<8x1xf32> -> vector<8x1xf32>
    %23 = vector.broadcast %22 : vector<8x1xf32> to vector<8x8xf32>
    %24 = arith.mulf %19, %23 : vector<8x8xf32>
    %25 = vector.shape_cast %24 : vector<8x8xf32> to vector<8x8x1xf32>
    %26 = vector.broadcast %25 : vector<8x8x1xf32> to vector<8x8x32xf32>
    %27 = arith.mulf %0, %26 : vector<8x8x32xf32>
    %cst_11 = arith.constant dense<0.000000e+00> : vector<8x32xf32>
    %28 = vector.multi_reduction <add>, %27, %cst_11 [1] : vector<8x8x32xf32> to vector<8x32xf32>
    %c0_12 = arith.constant 0 : index
    %c0_13 = arith.constant 0 : index
    %29 = vector.load %arg5[%c0_12, %c0_13] : memref<8x32xf32, #tpu.memory_space<vmem>>, vector<8x32xf32>
    tpu.vector_store %arg5[%c0_12, %c0_13], %28 {strides = array<i32>} : memref<8x32xf32, #tpu.memory_space<vmem>>, vector<8x32xf32>,
    return
  }
  func.func @transform_0(%arg0: i32) -> (i32, i32, i32) {
    %c0_i32 = arith.constant 0 : i32
    %c0_i32_0 = arith.constant 0 : i32
    %c0_i32_1 = arith.constant 0 : i32
    return %arg0, %c0_i32, %c0_i32_0 : i32, i32, i32
  }
  func.func @transform_1(%arg0: i32) -> (i32, i32) {
    %c0_i32 = arith.constant 0 : i32
    %c0_i32_0 = arith.constant 0 : i32
    %c0_i32_1 = arith.constant 0 : i32
    return %c0_i32, %c0_i32_0 : i32, i32
  }
  func.func @transform_2(%arg0: i32) -> (i32, i32) {
    %c0_i32 = arith.constant 0 : i32
    %c0_i32_0 = arith.constant 0 : i32
    %c0_i32_1 = arith.constant 0 : i32
    return %c0_i32, %c0_i32_0 : i32, i32
  }
  func.func @transform_3(%arg0: i32) -> (i32, i32) {
    %c0_i32 = arith.constant 0 : i32
    %c0_i32_0 = arith.constant 0 : i32
    %c0_i32_1 = arith.constant 0 : i32
    return %c0_i32, %c0_i32_0 : i32, i32
  }
  func.func @transform_4(%arg0: i32) -> (i32, i32) {
    %c0_i32 = arith.constant 0 : i32
    %c0_i32_0 = arith.constant 0 : i32
    return %arg0, %c0_i32 : i32, i32
  }
}

</mosaic_0001>

<bundles_post_ra>
// kernel: tpu_custom_call.1
= control target key start
LH: loop header
LB: loop body
LE: loop exit
PB: predicated region body
PF: predicated region fallthrough
CT: control target
= control target key end

     0   :  { %9 = vsyncpa [#allocation3], 0  ;;  %s1515_s0 = inlined_call_operand.hbm [shape: f32[16,8,32], index: 0, kind: input, shape index: {}]   ;;  %s1516_s1 = inlined_call_operand.hbm [shape: bf16[32,32], index: 1, kind: input, shape index: {}]   ;;  %s1517_s2 = inlined_call_operand.vmem [shape: f32[1,32], index: 2, kind: input, shape index: {}]   ;;  %s1518_s3 = inlined_call_operand.vmem [shape: f32[1,32], index: 3, kind: input, shape index: {}]   ;;  %s1519_s4 = inlined_call_operand.hbm [shape: f32[16,32], index: 4, kind: output, shape index: {}]  }
   0x1   :  { %11 = vsyncpa [#allocation3 + $0x1], 0 }
   0x2   :  { %12 = vsyncpa [#allocation6], 0 }
   0x3   :  { %13 = vsyncpa [#allocation4], 0 }
   0x4   :  { %15 = vsyncpa [#allocation4 + $0x1], 0  ;;  %s1168_s15 = smov 0   ;;  %s1170_s16 = smov 0  }
   0x5   :  { %s1172_s17 = smov 0   ;;  %s1174_s18 = smov 0  }
   0x6 LB: > { %s1189_s19 = sadd.s32 4294967295, %s1133_s18   ;;  %s859_s20 = sadd.s32 4294967294, %s1133_s18   ;;  %s1133_s18 = sphi %s1174_s18, %s1539_s18   ;;  %s1129_s17 = sphi %s1172_s17, %s1538_s17   ;;  %s1125_s16 = sphi %s1170_s16, %s1537_s16   ;;  %s1121_s15 = sphi %s1168_s15, %s1536_s15  }
   0x7   : > { %p41_p0 = scmp.ne.s32.totalorder %s1125_s16, %s1121_s15  ;;  %p1520_p1 = scmp.eq.s32.totalorder %s1189_s19, 0 }
   0x8   : > { %p134_p3 = scmp.eq.s32.totalorder %s859_s20, 1  ;;  %p860_p5 = scmp.ge.s32.totalorder %s1133_s18, 1 }
   0x9   : > { %p1198_p4 = por %p1520_p1, %p41_p0  ;;  %p141_p7 = scmp.lt.s32.totalorder %s1133_s18, 3 }
   0xa   : > { %p1203_p6 = por %p134_p3, %p41_p0  ;;  %s1135_s24 = smov [#allocation5]  }
   0xb   : > { %s1523_s21 = scalar_select %p1198_p4, 1, 0 }
   0xc   : > { %s1524_s22 = scalar_select %p1203_p6, 1, 0 }
   0xd   : > { %p1208_p8 = pnand %p860_p5, %p141_p7  ;;  %s153_s25 = sshll.u32 %s1135_s24, 4  ;;  %s1212_s25 = int_to_ptr.vmem [resolvable:$true] %s153_s25 }
   0xe   : > { %s1224_s27 = sadd.s32 1, %s1133_s18   ;;  %s28_s28 = sadd.s32 1, %s1129_s17 }
   0xf   : > { %s1525_s23 = scalar_select %p1208_p8, 1, 0 }
  0x10   : > { %p913_p9 = pneg %p1208_p8  ;;  %s25_s29 = ssub.s32 %s1133_s18, %s1224_s27 }
  0x11   : > { %s1005_s6 = scalar_lea.hbm %s1516_s1, 256 }
  0x12   : > { %p1219_p11 = pnand %p913_p9, %p1520_p1  ;;  %p1006_p12 = scmp.ne.s32.totalorder %s1516_s1, %s1005_s6 }
  0x13   : > { %p1012_p5 = scmp.lt.u32.totalorder %s1005_s6, %s1516_s1 }
  0x14   : > { %p1007_p13 = pneg %p1219_p11 }
  0x16   : > { %p1008_p0 = pnand %p1007_p13, %p1006_p12 }
  0x18   : > { %p1009_p3 = pneg %p1008_p0 }
  0x1a   : > { %p1014_p7 = pnand %p1012_p5, %p1009_p3 }
  0x1c   : > { %1017 = shalt.err (!%p1014_p7)
}
  0x1d   : > { %s1018_s11 = scalar_lea.vmem %s1212_s25, 256  ;;  %p1026_p2 = scmp.lt.s32.totalorder %s1212_s25, %s1212_s25 }
  0x1e   : > { %p1019_p9 = scmp.ne.s32.totalorder %s1212_s25, %s1018_s11  ;;  %p1027_p6 = scmp.lt.s32.totalorder %s1018_s11, %s1018_s11 }
  0x20   : > { %p1021_p10 = pnand %p1019_p9, %p1007_p13  ;;  %p1028_p4 = por %p1027_p6, %p1026_p2 }
  0x22   : > { %p1022_p1 = pneg %p1021_p10 }
  0x24   : > { %p1029_p8 = pnand %p1028_p4, %p1022_p1 }
  0x26   : > { %1032 = shalt.err (!%p1029_p8)
}
  0x27   : > { %s1136_s12 = smov 64   ;;  %s1137_s13 = smov 4  }
  0x28   : > { %916 = dma.hbm_to_vmem [thread:$0]  (!%p1219_p11), %s1516_s1, 256, %s1212_s25, [#allocation6], %s1136_s12, %s1136_s12, %s1137_s13  }
  0x29   : > { %p26_p2 = scmp.eq.s32.totalorder %s25_s29, 0  ;;  %p35_p1 = scmp.ne.s32.totalorder %s1129_s17, %s1125_s16 }
  0x2a   : > { %p36_p4 = scmp.eq.s32.totalorder %s1133_s18, 0  ;;  %p926_p6 = scmp.lt.s32.totalorder %s1133_s18, 2 }
  0x2b   : > { %s1255_s24 = scalar_select %p26_p2, %s1129_s17, %s28_s28  }
  0x2c   : > { %p37_p8 = por %p36_p4, %p35_p1  ;;  %p1527_p10 = scmp.eq.s32.totalorder %s1189_s19, 1 }
  0x2d   : > { %s173_s5 = sand.u32 1, %s1129_s17   ;;  %s882_s6 = sshll.u32 %s1133_s18, 10 }
  0x2e   : > { %p1259_p12 = por %p1527_p10, %p35_p1  ;;  %s863_s7 = sshll.u32 %s173_s5, 6 }
  0x2f   : > { %s1268_s9 = scalar_lea.hbm %s1515_s0, %s882_s6  ;;  %s177_s25 = scalar_lea.vmem [#allocation2], %s863_s7 }
  0x30   : > { %s184_s28 = sshll.u32 %s177_s25, 4  ;;  %p1270_p11 = pnand %p926_p6, %p37_p8  ;;  %s1274_s28 = int_to_ptr.vmem [resolvable:$true] %s184_s28 }
  0x31   : > { %s1276_s10 = scalar_lea.sflag [#allocation3], %s173_s5  ;;  %s1033_s11 = scalar_lea.hbm %s1268_s9, 1024 }
  0x32   : > { %p1034_p13 = scmp.ne.s32.totalorder %s1268_s9, %s1033_s11  ;;  %p1035_p0 = pneg %p1270_p11 }
  0x33   : > { %s1038_s14 = scalar_lea.hbm %s1515_s0, 2048  ;;  %p1039_p7 = scmp.lt.u32.totalorder %s1268_s9, %s1515_s0 }
  0x34   : > { %p1036_p3 = pnand %p1035_p0, %p1034_p13  ;;  %p1040_p9 = scmp.lt.u32.totalorder %s1038_s14, %s1033_s11 }
  0x35   : > { %p1042_p1 = scmp.lt.u32.totalorder %s1033_s11, %s1268_s9 }
  0x36   : > { %p1037_p5 = pneg %p1036_p3  ;;  %p1041_p2 = por %p1040_p9, %p1039_p7 }
  0x38   : > { %p1043_p4 = por %p1042_p1, %p1041_p2 }
  0x3a   : > { %p1044_p6 = pnand %p1043_p4, %p1037_p5 }
  0x3c   : > { %1047 = shalt.err (!%p1044_p6)
}
  0x3d   : > { %s1048_s5 = scalar_lea.vmem %s1274_s28, 1024  ;;  %s1138_s7 = smov [#allocation2]  }
  0x3e   : > { %p1049_p8 = scmp.ne.s32.totalorder %s1274_s28, %s1048_s5  ;;  %s1053_s26 = sshll.u32 %s1138_s7, 4  ;;  %s1054_s26 = int_to_ptr.vmem [resolvable:$false] %s1053_s26 }
  0x3f   : > { %s1055_s8 = scalar_lea.vmem %s1054_s26, 2048  ;;  %p1056_p3 = scmp.lt.s32.totalorder %s1274_s28, %s1054_s26 }
  0x40   : > { %p1051_p10 = pnand %p1049_p8, %p1035_p0  ;;  %p1057_p7 = scmp.lt.s32.totalorder %s1055_s8, %s1048_s5 }
  0x42   : > { %p1052_p13 = pneg %p1051_p10  ;;  %p1058_p9 = por %p1057_p7, %p1056_p3 }
  0x44   : > { %p1059_p2 = pnand %p1058_p9, %p1052_p13 }
  0x46   : > { %1062 = shalt.err (!%p1059_p2)
}
  0x47   : > { %s1139_s25 = smov 128   ;;  %s1140_s11 = smov 8  }
  0x48   : > { %920 = dma.hbm_to_vmem [thread:$0]  (!%p1270_p11), %s1268_s9, 1024, %s1274_s28, %s1276_s10, %s1139_s25, %s1139_s25, %s1140_s11  }
  0x49   : > { %p1530_p0 = scmp.ne.s32.totalorder %s1525_s23, 0 }
  0x4a   : > { %s1307_s12 = sand.u32 (!%p1530_p0), 1, %s1125_s16   ;;  %p1531_p5 = scmp.ne.s32.totalorder (!%p1530_p0), %s1523_s21, 0 }
  0x4b   : > { %196 = sbr.rel (%p1530_p0) target bundleno = 1141 (0x475), region = 36  ;;  %s867_s13 = sshll.u32 (!%p1530_p0), %s1307_s12, 6 }
  0x4c   : > { %s199_s14 = scalar_lea.sflag (!%p1530_p0), [#allocation3], %s1307_s12  ;;  %s202_s20 = scalar_lea.vmem (!%p1530_p0), [#allocation2], %s867_s13 }
  0x52   : > { %1108 = dma.done.wait (%p1531_p5), %s199_s14, 1024  }
  0x53   : > { %1110 = vsyncadd (%p1531_p5), %s199_s14, 4294966272  ;;  %p1532_p1 = scmp.eq.s32.totalorder %s1189_s19, 0 }
  0x55   : > { %1112 = dma.done.wait (%p1532_p1), [#allocation6], 256   ;;  %p1533_p11 = pmov %p1532_p1 }
  0x56   : > { %v969_v0 = vld [vmem:[#allocation5] sm:$0xff]   ;;  %v970_v1 = vld [vmem:[#allocation5 + $0x8] sm:$0xff]   ;;  %vm268_vm0 = vcmask 261120   ;;  %v1323_v4 = vld [vmem:[%s202_s20 + $0x10] sm:$0xff]  ;;  %v401_v56 = vlaneseq  ;;  %vm435_vm1 = vcmask 1041409   ;;  %vm437_vm2 = vcmask 1042434  }
  0x57   : > { %1114 = vsyncadd (%p1533_p11), [#allocation6], 4294967040  ;;  %889 = vmatprep.subr.bf16.mxu0 %v969_v0  ;;  %901 = vmatprep.subr.bf16.mxu1 %v969_v0  ;;  %v1319_v2 = vld [vmem:[%s202_s20] sm:$0xff]  ;;  %v1321_v3 = vld [vmem:[%s202_s20 + $0x8] sm:$0xff]  ;;  %vm439_vm3 = vcmask 1043459   ;;  %vm441_vm4 = vcmask 1044484  }
  0x58   : > { %890 = vmatpush3.bf16.msra.mxu0 %v969_v0  ;;  %903 = vmatpush3.bf16.msra.mxu1 %v969_v0  ;;  %v241_v5 = vpack.c.bf16 %v1321_v3, %v1319_v2  ;;  %v1327_v6 = vld [vmem:[%s202_s20 + $0x18] sm:$0xff]  ;;  %v1329_v7 = vld [vmem:[%s202_s20 + $0x20] sm:$0xff]  ;;  %v1331_v8 = vld [vmem:[%s202_s20 + $0x28] sm:$0xff]  ;;  %v402_v57 = vand.u32 127, %v401_v56  ;;  %v1361_v58 = vshrl.u32 %v401_v56, 7  ;;  %vm443_vm5 = vcmask 1045509  }
  0x59   : > { %891 = vmatprep.subr.bf16.mxu0 %v970_v1  ;;  %902 = vmatprep.subr.bf16.mxu1 %v970_v1  ;;  %v243_v9 = vpack.c.bf16 %v1331_v8, %v1329_v7  ;;  %v1335_v10 = vld [vmem:[%s202_s20 + $0x30] sm:$0xff]  ;;  %v1337_v11 = vld [vmem:[%s202_s20 + $0x38] sm:$0xff]  ;;  %v242_v12 = vpack.c.bf16 %v1327_v6, %v1323_v4  ;;  %v870_v14 = vld [vmem:[%s1517_s2] ss:$0 sm:$0xff]  ;;  %vm445_vm6 = vcmask 1046534   ;;  %vm447_vm7 = vcmask 1047559  }
  0x5a   : > { %893 = vmatprep.mubr.msk.bf16.mxu0 %vm268_vm0, %v241_v5  ;;  %v244_v13 = vpack.c.bf16 %v1337_v11, %v1335_v10  ;;  %v877_v31 = vld [vmem:[%s1518_s3] ss:$0 sm:$0xff]  ;;  %v1364_v61 = vsub.s32 %v402_v57, %v1361_v58  ;;  %vm450_vm8 = vcmask 64512   ;;  %s869_s29 = sshll.u32 %s1307_s12, 3  ;;  %s879_s10 = sshll.u32 %s1189_s19, 7 }
  0x5b   : > { %897 = vmatprep.mubr.msk.bf16.mxu1 %vm268_vm0, %v243_v9  ;;  %s230_s6 = scalar_lea.vmem [#allocation7], %s869_s29  ;;  %s1469_s8 = scalar_lea.hbm %s1519_s4, %s879_s10 }
  0x5c   : > { %892 = vmatpush3.bf16.msra.mxu0 %v970_v1  ;;  %904 = vmatpush3.bf16.msra.mxu1 %v970_v1  ;;  %s779_s5 = sshll.u32 %s230_s6, 4  ;;  %s766_s19 = scalar_lea.sflag [#allocation4], %s1307_s12  ;;  %s1471_s5 = int_to_ptr.vmem [resolvable:$true] %s779_s5 }
  0x5d   : > { %s1063_s25 = scalar_lea.vmem %s1471_s5, 128  ;;  %s1142_s11 = smov [#allocation7]  }
  0x5e   : > { %p1064_p4 = scmp.ne.s32.totalorder %s1471_s5, %s1063_s25  ;;  %s1067_s13 = sshll.u32 %s1142_s11, 4  ;;  %s1068_s13 = int_to_ptr.vmem [resolvable:$false] %s1067_s13 }
  0x5f   : > { %894 = vmatmul.mubr.msk.bf16.vlgmr.msra.gmra.mrb[0].mxu0 %vm268_vm0, %v242_v12  ;;  %898 = vmatmul.mubr.msk.bf16.vlgmr.msra.gmra.mrb[0].mxu1 %vm268_vm0, %v244_v13  ;;  %s1069_s14 = scalar_lea.vmem %s1068_s13, 256  ;;  %p1070_p10 = scmp.lt.s32.totalorder %s1471_s5, %s1068_s13 }
  0x60   : > { %p1065_p6 = pnand %p1064_p4, %p1259_p12  ;;  %p1071_p13 = scmp.lt.s32.totalorder %s1069_s14, %s1063_s25 }
  0x62   : > { %p1066_p8 = pneg %p1065_p6  ;;  %p1072_p3 = por %p1071_p13, %p1070_p10 }
  0x64   : > { %p1073_p7 = pnand %p1072_p3, %p1066_p8 }
 0x132   : > { %v895_v15 = vpop.f32.mrb[0].mxu0  ;;  %v899_v16 = vpop.f32.mrb[0].mxu1 }
 0x133   : > { %v324_v17 = vadd.f32 %v895_v15, %v870_v14  ;;  %v315_v18 = vpop.f32.mrb[1].mxu0  ;;  %v331_v19 = vpop.f32.mrb[1].mxu1  ;;  %v340_v30 = vadd.f32 %v899_v16, %v870_v14 }
 0x134   : > { %v316_v20 = vadd.f32 %v870_v14, %v315_v18  ;;  %v896_v21 = vpop.f32.mrb[2].mxu0  ;;  %v900_v22 = vpop.f32.mrb[2].mxu1  ;;  %v332_v27 = vadd.f32 %v870_v14, %v331_v19 }
 0x135   : > { %971 = vtanh.f32 %v324_v17  ;;  %v327_v23 = vadd.f32 %v896_v21, %v870_v14  ;;  %v318_v24 = vpop.f32.mrb[3].mxu0  ;;  %v334_v25 = vpop.f32.mrb[3].mxu1  ;;  %v343_v29 = vadd.f32 %v900_v22, %v870_v14 }
 0x136   : > { %973 = vtanh.f32 %v316_v20  ;;  %v319_v26 = vadd.f32 %v870_v14, %v318_v24  ;;  %v335_v28 = vadd.f32 %v870_v14, %v334_v25 }
 0x137   : > { %975 = vtanh.f32 %v327_v23 }
 0x138   : > { %977 = vtanh.f32 %v319_v26 }
 0x139   : > { %979 = vtanh.f32 %v332_v27 }
 0x13a   : > { %981 = vtanh.f32 %v335_v28  ;;  %v1141_v28 = vmov 0  }
 0x13b   : > { %983 = vtanh.f32 %v343_v29  ;;  %968 = vset.pattern.permute.xlu0 %v1141_v28  ;;  %967 = vset.pattern.permute.xlu1 %v1141_v28  ;;  %v457_v29 = vsub.s32 0, %v1361_v58 }
 0x13c   : > { %985 = vtanh.f32 %v340_v30  ;;  %v461_v30 = vsub.s32 1, %v1361_v58 }
 0x13f   : > { %v972_v32 = vpop.eup %971 }
 0x140   : > { %v974_v33 = vpop.eup %973  ;;  %v363_v34 = vmul.f32 %v972_v32, %v877_v31  ;;  %v469_v32 = vsub.s32 3, %v1361_v58 }
 0x141   : > { %v976_v35 = vpop.eup %975  ;;  %v361_v36 = vmul.f32 %v974_v33, %v877_v31 }
 0x142   : > { %v978_v37 = vpop.eup %977  ;;  %v375_v38 = vsel %vm268_vm0, %v363_v34, 0.0  ;;  %v364_v39 = vmul.f32 %v976_v35, %v877_v31 }
 0x143   : > { %376 = vadd.xlane.f32.xlu1 %v375_v38  ;;  %v369_v40 = vsel %vm268_vm0, %v361_v36, 0.0  ;;  %v362_v41 = vmul.f32 %v978_v37, %v877_v31  ;;  %v980_v42 = vpop.eup %979  ;;  %v473_v37 = vsub.s32 4, %v1361_v58 }
 0x144   : > { %370 = vadd.xlane.f32.xlu0 %v369_v40  ;;  %v982_v43 = vpop.eup %981  ;;  %v378_v44 = vsel %vm268_vm0, %v364_v39, 0.0  ;;  %v365_v48 = vmul.f32 %v980_v42, %v877_v31 }
 0x145   : > { %v984_v45 = vpop.eup %983  ;;  %v372_v46 = vsel %vm268_vm0, %v362_v41, 0.0  ;;  %v366_v47 = vmul.f32 %v982_v43, %v877_v31 }
 0x146   : > { %v986_v49 = vpop.eup %985  ;;  %v368_v51 = vmul.f32 %v984_v45, %v877_v31  ;;  %v381_v52 = vsel %vm268_vm0, %v365_v48, 0.0  ;;  %v481_v48 = vsub.s32 6, %v1361_v58 }
 0x147   : > { %379 = vadd.xlane.f32.xlu1 %v378_v44  ;;  %v384_v50 = vsel %vm268_vm0, %v366_v47, 0.0  ;;  %v367_v53 = vmul.f32 %v986_v49, %v877_v31  ;;  %v465_v31 = vsub.s32 2, %v1361_v58  ;;  %v477_v44 = vsub.s32 5, %v1361_v58 }
 0x148   : > { %373 = vadd.xlane.f32.xlu0 %v372_v46  ;;  %v390_v54 = vsel %vm268_vm0, %v368_v51, 0.0 }
 0x149   : > { %v387_v55 = vsel %vm268_vm0, %v367_v53, 0.0 }
 0x14b   : > { %385 = vadd.xlane.f32.xlu1 %v384_v50 }
 0x14c   : > { %382 = vadd.xlane.f32.xlu0 %v381_v52  ;;  %v485_v52 = vsub.s32 7, %v1361_v58 }
 0x14f   : > { %391 = vadd.xlane.f32.xlu1 %v390_v54 }
 0x150   : > { %388 = vadd.xlane.f32.xlu0 %v387_v55 }
 0x1d0   : > { %v377_v59 = vpop.xlane.xlu1 %376 }
 0x1d1   : > { %v371_v60 = vpop.xlane.xlu0 %370  ;;  %v414_v5 = vrot.slane %v377_v59, %v1364_v61 }
 0x1d2   : > { %v406_v0 = vrot.slane %v371_v60, %v1364_v61 }
 0x1d4   : > { %v380_v62 = vpop.xlane.xlu1 %379 }
 0x1d5   : > { %v374_v63 = vpop.xlane.xlu0 %373  ;;  %v418_v9 = vrot.slane %v380_v62, %v1364_v61 }
 0x1d6   : > { %v410_v1 = vrot.slane %v374_v63, %v1364_v61 }
 0x1d8   : > { %v436_v12 = vsel %vm435_vm1, %v410_v1, %v406_v0  ;;  %v386_v13 = vpop.xlane.xlu1 %385 }
 0x1d9   : > { %v438_v14 = vsel %vm437_vm2, %v414_v5, %v436_v12  ;;  %v383_v15 = vpop.xlane.xlu0 %382  ;;  %v426_v20 = vrot.slane %v386_v13, %v1364_v61 }
 0x1da   : > { %v440_v16 = vsel %vm439_vm3, %v418_v9, %v438_v14  ;;  %v422_v17 = vrot.slane %v383_v15, %v1364_v61 }
 0x1dc   : > { %v442_v18 = vsel %vm441_vm4, %v422_v17, %v440_v16  ;;  %v1375_v19 = vpop.xlane.xlu1 %391 }
 0x1dd   : > { %v389_v21 = vpop.xlane.xlu0 %388  ;;  %v434_v23 = vrot.slane %v1375_v19, %v1364_v61  ;;  %v444_v24 = vsel %vm443_vm5, %v426_v20, %v442_v18 }
 0x1de   : > { %v430_v22 = vrot.slane %v389_v21, %v1364_v61 }
 0x1e0   : > { %v446_v25 = vsel %vm445_vm6, %v430_v22, %v444_v24 }
 0x1e1   : > { %v448_v26 = vsel %vm447_vm7, %v434_v23, %v446_v25 }
 0x1e2   : > { %v451_v27 = vsel %vm450_vm8, %v448_v26, -inf }
 0x1e3   : > { %452 = vmax.xlane.f32.xlu0 %v451_v27 }
 0x270   : > { %v453_v33 = vpop.xlane.xlu0 %452 }
 0x271   : > { %v458_v34 = vrot.slane %v453_v33, %v457_v29  ;;  %v462_v35 = vrot.slane %v453_v33, %v461_v30  ;;  %v466_v36 = vrot.slane %v453_v33, %v465_v31  ;;  %v470_v38 = vrot.slane %v453_v33, %v469_v32 }
 0x272   : > { %v474_v45 = vrot.slane %v453_v33, %v473_v37  ;;  %v478_v49 = vrot.slane %v453_v33, %v477_v44  ;;  %v482_v53 = vrot.slane %v453_v33, %v481_v48 }
 0x273   : > { %v495_v39 = vsub.f32 %v371_v60, %v458_v34  ;;  %v496_v40 = vsub.f32 %v374_v63, %v462_v35  ;;  %v497_v41 = vsub.f32 %v377_v59, %v466_v36  ;;  %v498_v46 = vsub.f32 %v380_v62, %v470_v38 }
 0x274   : > { %v499_v50 = vsub.f32 %v383_v15, %v474_v45  ;;  %v500_v54 = vsub.f32 %v386_v13, %v478_v49  ;;  %v486_v59 = vrot.slane %v453_v33, %v485_v52  ;;  %v501_v60 = vsub.f32 %v389_v21, %v482_v53 }
 0x275   : > { %v503_v42 = vmul.f32 1.442695, %v495_v39  ;;  %v505_v43 = vmul.f32 1.442695, %v496_v40  ;;  %v507_v47 = vmul.f32 1.442695, %v497_v41 }
 0x276   : > { %v509_v51 = vmul.f32 1.442695, %v498_v46  ;;  %v511_v55 = vmul.f32 1.442695, %v499_v50  ;;  %v513_v62 = vmul.f32 1.442695, %v500_v54  ;;  %v502_v0 = vsub.f32 %v1375_v19, %v486_v59 }
 0x277   : > { %987 = vpow2.f32 %v503_v42  ;;  %v515_v1 = vmul.f32 1.442695, %v501_v60 }
 0x278   : > { %989 = vpow2.f32 %v505_v43  ;;  %v517_v9 = vmul.f32 1.442695, %v502_v0 }
 0x279   : > { %991 = vpow2.f32 %v507_v47 }
 0x27a   : > { %993 = vpow2.f32 %v509_v51 }
 0x27b   : > { %995 = vpow2.f32 %v511_v55 }
 0x27c   : > { %997 = vpow2.f32 %v513_v62 }
 0x27d   : > { %999 = vpow2.f32 %v515_v1 }
 0x27e   : > { %1001 = vpow2.f32 %v517_v9 }
 0x281   : > { %v988_v56 = vpop.eup %987 }
 0x282   : > { %v990_v57 = vpop.eup %989  ;;  %528 = vperm.xlu1 %967, %v988_v56  }
 0x283   : > { %531 = vperm.xlu0 %968, %v990_v57   ;;  %v992_v63 = vpop.eup %991 }
 0x284   : > { %v994_v5 = vpop.eup %993 }
 0x285   : > { %v996_v12 = vpop.eup %995 }
 0x286   : > { %534 = vperm.xlu1 %967, %v992_v63   ;;  %v998_v13 = vpop.eup %997 }
 0x287   : > { %v1000_v14 = vpop.eup %999 }
 0x288   : > { %v1002_v15 = vpop.eup %1001 }
 0x28a   : > { %537 = vperm.xlu1 %967, %v994_v5  }
 0x28e   : > { %540 = vperm.xlu1 %967, %v996_v12  }
 0x292   : > { %543 = vperm.xlu1 %967, %v998_v13  }
 0x296   : > { %546 = vperm.xlu1 %967, %v1000_v14  }
 0x29a   : > { %549 = vperm.xlu1 %967, %v1002_v15  }
 0x301   : > { %v529_v16 = vpop.permute.xlu1 %528 }
 0x302   : > { %v532_v19 = vpop.permute.xlu0 %531  ;;  %v554_v23 = vrot.slane %v529_v16, %v1364_v61 }
 0x303   : > { %v558_v22 = vrot.slane %v532_v19, %v1364_v61 }
 0x305   : > { %v535_v17 = vpop.permute.xlu1 %534  ;;  %v583_v28 = vsel %vm435_vm1, %v558_v22, %v554_v23 }
 0x306   : > { %v562_v24 = vrot.slane %v535_v17, %v1364_v61 }
 0x308   : > { %v584_v34 = vsel %vm437_vm2, %v562_v24, %v583_v28 }
 0x309   : > { %v538_v18 = vpop.permute.xlu1 %537 }
 0x30a   : > { %v566_v25 = vrot.slane %v538_v18, %v1364_v61 }
 0x30c   : > { %v585_v36 = vsel %vm439_vm3, %v566_v25, %v584_v34 }
 0x30d   : > { %v541_v20 = vpop.permute.xlu1 %540 }
 0x30e   : > { %v570_v26 = vrot.slane %v541_v20, %v1364_v61 }
 0x310   : > { %v586_v38 = vsel %vm441_vm4, %v570_v26, %v585_v36 }
 0x311   : > { %v544_v21 = vpop.permute.xlu1 %543 }
 0x312   : > { %v574_v33 = vrot.slane %v544_v21, %v1364_v61 }
 0x314   : > { %v587_v40 = vsel %vm443_vm5, %v574_v33, %v586_v38 }
 0x315   : > { %v547_v27 = vpop.permute.xlu1 %546 }
 0x316   : > { %v578_v35 = vrot.slane %v547_v27, %v1364_v61 }
 0x318   : > { %v588_v42 = vsel %vm445_vm6, %v578_v35, %v587_v40 }
 0x319   : > { %v550_v39 = vpop.permute.xlu1 %549 }
 0x31a   : > { %v582_v41 = vrot.slane %v550_v39, %v1364_v61 }
 0x31c   : > { %v589_v43 = vsel %vm447_vm7, %v582_v41, %v588_v42 }
 0x31d   : > { %v591_v45 = vsel %vm450_vm8, %v589_v43, 0.0 }
 0x31e   : > { %592 = vadd.xlane.f32.xlu1 %v591_v45 }
 0x3ab   : > { %v593_v46 = vpop.xlane.xlu1 %592 }
 0x3ac   : > { %1003 = vrcp.f32 %v593_v46 }
 0x3b6   : > { %v1004_v47 = vpop.eup %1003 }
 0x3b7   : > { %v599_v49 = vrot.slane %v1004_v47, %v457_v29  ;;  %v603_v51 = vrot.slane %v1004_v47, %v461_v30  ;;  %v607_v61 = vrot.slane %v1004_v47, %v465_v31  ;;  %v611_v55 = vrot.slane %v1004_v47, %v469_v32 }
 0x3b8   : > { %v615_v60 = vrot.slane %v1004_v47, %v473_v37  ;;  %v619_v30 = vrot.slane %v1004_v47, %v477_v44  ;;  %v623_v31 = vrot.slane %v1004_v47, %v481_v48  ;;  %v627_v32 = vrot.slane %v1004_v47, %v485_v52 }
 0x3b9   : > { %v636_v50 = vmul.f32 %v988_v56, %v599_v49  ;;  %v637_v53 = vmul.f32 %v990_v57, %v603_v51  ;;  %v638_v54 = vmul.f32 %v992_v63, %v607_v61  ;;  %v639_v59 = vmul.f32 %v994_v5, %v611_v55 }
 0x3ba   : > { %v640_v29 = vmul.f32 %v996_v12, %v615_v60  ;;  %v641_v56 = vmul.f32 %v998_v13, %v619_v30  ;;  %v642_v57 = vmul.f32 %v1000_v14, %v623_v31  ;;  %v643_v62 = vmul.f32 %v1002_v15, %v627_v32 }
 0x3bb   : > { %646 = vperm.xlu0 %968, %v636_v50  }
 0x3bf   : > { %651 = vperm.xlu0 %968, %v637_v53  }
 0x3c3   : > { %656 = vperm.xlu0 %968, %v638_v54  }
 0x3c7   : > { %661 = vperm.xlu0 %968, %v639_v59  }
 0x3cb   : > { %666 = vperm.xlu0 %968, %v640_v29  }
 0x3cf   : > { %671 = vperm.xlu0 %968, %v641_v56  }
 0x3d3   : > { %676 = vperm.xlu0 %968, %v642_v57  }
 0x3d7   : > { %681 = vperm.xlu0 %968, %v643_v62  }
 0x43a   : > { %v647_v63 = vpop.permute.xlu0 %646 }
 0x43b   : > { %v684_v44 = vmul.f32 %v647_v63, %v1319_v2 }
 0x43d   : > { %v692_v58 = vsel %vm268_vm0, %v684_v44, 0.0 }
 0x43e   : > { %v652_v37 = vpop.permute.xlu0 %651  ;;  %v693_v16 = vrot.slane %v692_v58, 4 }
 0x43f   : > { %v685_v0 = vmul.f32 %v652_v37, %v1321_v3 }
 0x440   : > { %v694_v19 = vadd.f32 %v693_v16, %v692_v58 }
 0x441   : > { %v699_v9 = vsel %vm268_vm0, %v685_v0, 0.0 }
 0x442   : > { %v657_v1 = vpop.permute.xlu0 %656  ;;  %v700_v13 = vrot.slane %v699_v9, 4  ;;  %v695_v28 = vrot.slane %v694_v19, 2 }
 0x443   : > { %v686_v5 = vmul.f32 %v657_v1, %v1323_v4 }
 0x444   : > { %v701_v18 = vadd.f32 %v700_v13, %v699_v9  ;;  %v696_v42 = vadd.f32 %v695_v28, %v694_v19 }
 0x445   : > { %v706_v48 = vsel %vm268_vm0, %v686_v5, 0.0 }
 0x446   : > { %v662_v12 = vpop.permute.xlu0 %661  ;;  %v707_v14 = vrot.slane %v706_v48, 4  ;;  %v697_v54 = vrot.slane %v696_v42, 1 }
 0x447   : > { %v687_v52 = vmul.f32 %v662_v12, %v1327_v6  ;;  %v702_v6 = vrot.slane %v701_v18, 2 }
 0x448   : > { %v708_v4 = vadd.f32 %v707_v14, %v706_v48  ;;  %v698_v62 = vadd.f32 %v697_v54, %v696_v42 }
 0x449   : > { %v713_v15 = vsel %vm268_vm0, %v687_v52, 0.0  ;;  %v703_v38 = vadd.f32 %v702_v6, %v701_v18 }
 0x44a   : > { %v714_v3 = vrot.slane %v713_v15, 4  ;;  %v667_v17 = vpop.permute.xlu0 %666  ;;  %v709_v26 = vrot.slane %v708_v4, 2 }
 0x44b   : > { %v688_v2 = vmul.f32 %v667_v17, %v1329_v7  ;;  %v704_v50 = vrot.slane %v703_v38, 1 }
 0x44c   : > { %v715_v21 = vadd.f32 %v714_v3, %v713_v15  ;;  %v710_v40 = vadd.f32 %v709_v26, %v708_v4 }
 0x44d   : > { %v720_v20 = vsel %vm268_vm0, %v688_v2, 0.0  ;;  %v705_v30 = vadd.f32 %v704_v50, %v703_v38 }
 0x44e   : > { %v721_v22 = vrot.slane %v720_v20, 4  ;;  %v672_v23 = vpop.permute.xlu0 %671  ;;  %v716_v33 = vrot.slane %v715_v21, 2  ;;  %v711_v61 = vrot.slane %v710_v40, 1 }
 0x44f   : > { %v689_v24 = vmul.f32 %v672_v23, %v1331_v8  ;;  %v756_v1 = vsel %vm435_vm1, %v705_v30, %v698_v62 }
 0x450   : > { %v722_v25 = vadd.f32 %v721_v22, %v720_v20  ;;  %v717_v43 = vadd.f32 %v716_v33, %v715_v21  ;;  %v712_v32 = vadd.f32 %v711_v61, %v710_v40 }
 0x451   : > { %v727_v27 = vsel %vm268_vm0, %v689_v24, 0.0 }
 0x452   : > { %v728_v34 = vrot.slane %v727_v27, 4  ;;  %v677_v35 = vpop.permute.xlu0 %676  ;;  %v723_v7 = vrot.slane %v722_v25, 2  ;;  %v718_v55 = vrot.slane %v717_v43, 1  ;;  %v757_v9 = vsel %vm437_vm2, %v712_v32, %v756_v1 }
 0x453   : > { %v690_v36 = vmul.f32 %v677_v35, %v1335_v10 }
 0x454   : > { %v729_v39 = vadd.f32 %v728_v34, %v727_v27  ;;  %v724_v47 = vadd.f32 %v723_v7, %v722_v25 }
 0x455   : > { %v734_v41 = vsel %vm268_vm0, %v690_v36, 0.0 }
 0x456   : > { %v730_v8 = vrot.slane %v729_v39, 2  ;;  %v735_v45 = vrot.slane %v734_v41, 4  ;;  %v682_v46 = vpop.permute.xlu0 %681  ;;  %v725_v29 = vrot.slane %v724_v47, 1 }
 0x457   : > { %v691_v49 = vmul.f32 %v682_v46, %v1337_v11  ;;  %v719_v11 = vadd.f32 %v718_v55, %v717_v43 }
 0x458   : > { %v731_v51 = vadd.f32 %v730_v8, %v729_v39  ;;  %v736_v53 = vadd.f32 %v735_v45, %v734_v41  ;;  %v726_v0 = vadd.f32 %v725_v29, %v724_v47 }
 0x459   : > { %v741_v10 = vsel %vm268_vm0, %v691_v49, 0.0  ;;  %v758_v12 = vsel %vm439_vm3, %v719_v11, %v757_v9 }
 0x45a   : > { %v737_v59 = vrot.slane %v736_v53, 2  ;;  %v742_v60 = vrot.slane %v741_v10, 4  ;;  %v732_v56 = vrot.slane %v731_v51, 1  ;;  %v759_v52 = vsel %vm441_vm4, %v726_v0, %v758_v12 }
 0x45c   : > { %v738_v31 = vadd.f32 %v737_v59, %v736_v53  ;;  %v743_v57 = vadd.f32 %v742_v60, %v741_v10  ;;  %v733_v44 = vadd.f32 %v732_v56, %v731_v51 }
 0x45e   : > { %v739_v63 = vrot.slane %v738_v31, 1  ;;  %v744_v37 = vrot.slane %v743_v57, 2  ;;  %v760_v13 = vsel %vm443_vm5, %v733_v44, %v759_v52 }
 0x460   : > { %v745_v5 = vadd.f32 %v744_v37, %v743_v57  ;;  %v740_v48 = vadd.f32 %v739_v63, %v738_v31 }
 0x462   : > { %v746_v58 = vrot.slane %v745_v5, 1  ;;  %v761_v15 = vsel %vm445_vm6, %v740_v48, %v760_v13 }
 0x464   : > { %v747_v14 = vadd.f32 %v746_v58, %v745_v5 }
 0x466   : > { %v762_v16 = vsel %vm447_vm7, %v747_v14, %v761_v15 }
 0x467   : > { %764 = vst.msk [vmem:[%s230_s6] sm:$0xff] %vm268_vm0, %v762_v16 }
 0x468   : > { %1076 = shalt.err (!%p1073_p7)
}
 0x469   : > { %s1077_s12 = scalar_lea.hbm %s1469_s8, 128  ;;  %s1081_s23 = scalar_lea.hbm %s1519_s4, 256 }
 0x46a   : > { %p1078_p9 = scmp.ne.s32.totalorder %s1469_s8, %s1077_s12  ;;  %p1082_p5 = scmp.lt.u32.totalorder %s1469_s8, %s1519_s4 }
 0x46b   : > { %p1083_p1 = scmp.lt.u32.totalorder %s1081_s23, %s1077_s12  ;;  %p1085_p4 = scmp.lt.u32.totalorder %s1077_s12, %s1469_s8 }
 0x46c   : > { %p1079_p2 = pnand %p1078_p9, %p1259_p12 }
 0x46d   : > { %p1084_p11 = por %p1083_p1, %p1082_p5 }
 0x46e   : > { %p1080_p0 = pneg %p1079_p2 }
 0x46f   : > { %p1086_p6 = por %p1085_p4, %p1084_p11 }
 0x471   : > { %p1087_p8 = pnand %p1086_p6, %p1080_p0 }
 0x473   : > { %1090 = shalt.err (!%p1087_p8)
}
 0x474   : > { %911 = dma.vmem_to_hbm [thread:$0]  (%p1259_p12), %s1471_s5, 128, %s1469_s8, %s766_s19  }
 0x475 PF: > { %s791_s29 = sand.u32 1, %s1121_s15   ;;  %p1534_p10 = scmp.ne.s32.totalorder %s1524_s22, 0 }
 0x476   : > { %p1535_p13 = scmp.ge.s32.totalorder %s1133_s18, 2  ;;  %s792_s10 = scalar_lea.sflag [#allocation4], %s791_s29 }
 0x478   : > { %p922_p3 = pnand %p1535_p13, %p1534_p10 }
 0x47a   : > { %1116 = dma.done.wait (!%p922_p3), %s792_s10, 128  }
 0x47b   : > { %1118 = vsyncadd (!%p922_p3), %s792_s10, 4294967168  ;;  %p18_p7 = scmp.ge.s32.totalorder %s1224_s27, 4   ;;  %s1536_s15 = smov %s1125_s16 }
 0x47c   : > { %s1537_s16 = smov %s1129_s17  ;;  %s1538_s17 = smov %s1255_s24 }
 0x47d   : > { %s1539_s18 = smov %s1224_s27  ;;  %20 = sbr.rel (!%p18_p7) target bundleno = 6 (0x6), region = 85 }
 0x484   :  { %797 = vsyncpa [#allocation3], 1 }
 0x485   :  { %799 = vsyncpa [#allocation3 + $0x1], 1 }
 0x486   :  { %800 = vsyncpa [#allocation6], 1 }
 0x487   :  { %801 = vsyncpa [#allocation4], 1 }
 0x488   :  { %803 = vsyncpa [#allocation4 + $0x1], 1 }

</bundles_post_ra>
